<compile_context>
chip_gen: v6e
topology: v6e:2x2x1
jax: 0.10.0
libtpu: 0.0.40
codegen_flags: <defaults>
</compile_context>

<pallas_src>
import functools

import jax
import jax.numpy as jnp
from jax import lax
from jax.experimental import pallas as pl
from jax.experimental.pallas import tpu as pltpu

_EPS = 1e-12            # F.normalize default eps
_LANE = 128             # lane width
_SUBLANE = 16           # multiple-of-16 covers f32 (8) and bf16 (16) sublane packing
_VMEM_BUDGET = 48 << 20  # stay comfortably under v7x's 64 MiB physical VMEM


def _round_up(x, m):
    return ((x + m - 1) // m) * m


def _reid_embedding_kernel(num_heads, d_pads, *refs):
    """Fused per-head Linear (bias=False) -> row-wise L2 normalize -> sliced stores."""
    x_refs = refs[:num_heads]
    wt_refs = refs[num_heads:2 * num_heads]
    o_ref = refs[2 * num_heads]

    # Per-head projections on the MXU (native dtype in, f32 accumulator) and
    # per-head partial squared norms summed into one (TILE_N, 1) f32 vector.
    projs = []
    sq_norm = None
    for h in range(num_heads):
        p = jnp.dot(x_refs[h][...], wt_refs[h][...],
                    preferred_element_type=jnp.float32)
        projs.append(p)
        s = jnp.sum(p * p, axis=1, keepdims=True)
        sq_norm = s if sq_norm is None else sq_norm + s

    # F.normalize(p=2, dim=1, eps=1e-12): x / max(||x||, eps)
    #   == x * rsqrt(max(||x||^2, eps^2))   (rsqrt on EUP, multiply on VPU)
    inv = lax.rsqrt(jnp.maximum(sq_norm, _EPS * _EPS))

    # Direct per-head stores into lane-aligned output column slices (no concat).
    off = 0
    for h in range(num_heads):
        d = d_pads[h]
        o_ref[:, pl.ds(off, d)] = (projs[h] * inv).astype(o_ref.dtype)
        off += d


def _pick_tile_n(n, x_itemsize):
    """Batch tile: dtype-gated default; split mid-size batches across 2 TCs (v7x)."""
    if n <= 16:
        return n
    base = 1024 if x_itemsize <= 2 else 256
    if n <= base:
        # >= 2 grid steps so dimension_semantics=('parallel',) shards across v7x cores.
        tn = _round_up(pl.cdiv(n, 2), _SUBLANE)
        return min(tn, n)
    return base


def _vmem_bytes(tn, c_ins, d_pads, x_itemsize, out_itemsize):
    """Conservative footprint: 2 buffers for x/out/weights (even if weights get 1)."""
    x_b = 2 * sum(tn * c for c in c_ins) * x_itemsize
    w_b = 2 * sum(c * d for c, d in zip(c_ins, d_pads)) * x_itemsize
    o_b = 2 * tn * sum(d_pads) * out_itemsize
    return x_b + w_b + o_b


def reid_embedding_forward(xs, wts_pad, d_pads, *, tile_n=None):
    """Fused forward for all heads.

    xs      : list of (N, C_in_h) flattened feature maps (same N).
    wts_pad : list of (C_in_h, D_pad_h) pre-transposed, lane-padded Linear weights.
    d_pads  : list of padded head dims (each a multiple of 128).
    returns (N, sum(D_pad_h)) L2-normalized embeddings (pad columns are exactly zero).
    """
    num_heads = len(xs)
    assert num_heads == len(wts_pad) == len(d_pads) and num_heads >= 1
    dtype = xs[0].dtype
    xs = [x.astype(dtype) for x in xs]
    wts = [w.astype(dtype) for w in wts_pad]  # dtype-matched MXU feed (bf16 path)
    n = int(xs[0].shape[0])
    c_ins = [int(x.shape[1]) for x in xs]
    d_pads = tuple(int(d) for d in d_pads)
    d_total_pad = sum(d_pads)
    x_item = jnp.dtype(dtype).itemsize
    out_item = x_item

    tn = _pick_tile_n(n, x_item) if tile_n is None else min(int(tile_n), n)
    while tn > _SUBLANE and _vmem_bytes(tn, c_ins, d_pads, x_item, out_item) > _VMEM_BUDGET:
        tn = max(_SUBLANE, _round_up(tn // 2, _SUBLANE))
    grid = (pl.cdiv(n, tn),)

    footprint = _vmem_bytes(tn, c_ins, d_pads, x_item, out_item)
    vmem_limit = int(min(64 << 20, max(16 << 20, footprint + (4 << 20))))

    flops = 2 * n * sum(c * d for c, d in zip(c_ins, d_pads))
    bytes_accessed = (n * sum(c_ins) * x_item
                      + sum(c * d for c, d in zip(c_ins, d_pads)) * x_item
                      + n * d_total_pad * out_item)
    cost = pl.CostEstimate(flops=flops, transcendentals=n,
                           bytes_accessed=bytes_accessed)

    kernel = functools.partial(_reid_embedding_kernel, num_heads, d_pads)
    out_shape = jax.ShapeDtypeStruct((n, d_total_pad), dtype)
    out_spec = pl.BlockSpec((tn, d_total_pad), lambda i: (i, 0))

    def build(weight_pipeline_mode):
        in_specs = []
        for c in c_ins:
            in_specs.append(pl.BlockSpec((tn, c), lambda i: (i, 0)))
        for c, d in zip(c_ins, d_pads):
            if weight_pipeline_mode is None:
                in_specs.append(pl.BlockSpec((c, d), lambda i: (0, 0)))
            else:
                in_specs.append(pl.BlockSpec((c, d), lambda i: (0, 0),
                                             pipeline_mode=weight_pipeline_mode))
        return pl.pallas_call(
            kernel,
            out_shape=out_shape,
            grid_spec=pltpu.PrefetchScalarGridSpec(
                num_scalar_prefetch=0,
                grid=grid,
                in_specs=in_specs,
                out_specs=out_spec,
            ),
            compiler_params=pltpu.CompilerParams(
                dimension_semantics=("parallel",),   # batch tiles are independent
                vmem_limit_bytes=vmem_limit,
            ),
            cost_estimate=cost,
        )

    try:
        # Resident weights: single buffer (index_map is constant), halves their footprint.
        return build(pl.Buffered(1))(*xs, *wts)
    except Exception:
        # Fallback to default double-buffering if Buffered(1) is rejected by this jax build.
        return build(None)(*xs, *wts)


def _flatten_fc_input(x):
    if x.ndim == 4:
        assert x.shape[2] == 1 and x.shape[3] == 1, "expected (N, C, 1, 1)"
        return x.reshape(x.shape[0], x.shape[1])
    return x


class ReIDEmbeddingPallas:
    """JAX/Pallas port of ReIDEmbedding (norm_type='none')."""

    def __init__(self, featmap_names=("feat_res5",), in_channels=(2048,),
                 dim=256, norm_type="none", key=None, param_dtype=jnp.float32):
        assert len(featmap_names) == len(in_channels)
        # TODO(synk): norm_type='protonorm' (PrototypeNorm1d) not implemented.
        assert norm_type == "none"
        self.featmap_names = list(featmap_names)
        self.in_channels = [int(c) for c in in_channels]
        self.dim = int(dim)
        self.indv_dims = [int(d) for d in self._split_embedding_dim()]
        self.d_pads = [_round_up(d, _LANE) for d in self.indv_dims]
        if key is None:
            key = jax.random.PRNGKey(0)
        self.weights = {}     # PyTorch layout (D_h, C_in_h), f32 -- reference / export
        self.weights_t = {}   # pre-transposed + lane-padded (C_in_h, D_pad_h) -- kernel
        for ftname, in_ch, d_real, d_pad in zip(self.featmap_names, self.in_channels,
                                                self.indv_dims, self.d_pads):
            key, sub = jax.random.split(key)
            # init.normal_(weight, std=0.01); shape (out_features, in_features)
            w = 0.01 * jax.random.normal(sub, (d_real, in_ch), dtype=jnp.float32)
            self.weights[ftname] = w
            wt = jnp.zeros((in_ch, d_pad), jnp.float32).at[:, :d_real].set(w.T)
            self.weights_t[ftname] = wt.astype(param_dtype)

    def _split_embedding_dim(self):
        parts = len(self.in_channels)
        tmp = [self.dim / parts] * parts
        if sum(tmp) == self.dim:
            return tmp
        res = self.dim % parts
        for i in range(1, res + 1):
            tmp[-i] += 1
        assert sum(tmp) == self.dim
        return tmp

    def __call__(self, featmaps):
        xs = [_flatten_fc_input(featmaps[k]) for k in self.featmap_names]
        wts = [self.weights_t[k] for k in self.featmap_names]
        out = reid_embedding_forward(xs, wts, self.d_pads)
        # Slice away lane-padding columns (no-op when every head dim is a 128 multiple).
        if any(dp != dr for dp, dr in zip(self.d_pads, self.indv_dims)):
            cols, off = [], 0
            for dr, dp in zip(self.indv_dims, self.d_pads):
                cols.append(out[:, off:off + dr])
                off += dp
            out = cols[0] if len(cols) == 1 else jnp.concatenate(cols, axis=1)
        return out


def _reference_forward(featmaps, model):
    """Pure-JAX reference for correctness check (dtype-matched weights, f32 math)."""
    xs = [_flatten_fc_input(featmaps[k]) for k in model.featmap_names]
    dtype = xs[0].dtype
    outs = []
    for k, x in zip(model.featmap_names, xs):
        w = model.weights[k].astype(dtype).astype(jnp.float32)
        outs.append(jnp.dot(x.astype(jnp.float32), w.T))
    cat = jnp.concatenate(outs, axis=1)
    nrm = jnp.sqrt(jnp.sum(cat * cat, axis=1, keepdims=True))
    return (cat / jnp.maximum(nrm, _EPS)).astype(dtype)


if __name__ == "__main__":
    key = jax.random.PRNGKey(0)
    k1, k2, k3, k4, k5, k6, k7 = jax.random.split(key, 7)

    # ---- Single-featmap case (NCHW input with 1x1 spatial), small f32 shapes ----
    batch, in_ch, dim = 8, 32, 16
    x = jax.random.normal(k1, (batch, in_ch, 1, 1), dtype=jnp.float32)
    model1 = ReIDEmbeddingPallas(featmap_names=("feat_res5",),
                                 in_channels=(in_ch,), dim=dim, key=k2)
    out1 = jax.block_until_ready(model1({"feat_res5": x}))
    ref1 = _reference_forward({"feat_res5": x}, model1)
    assert out1.shape == (batch, dim)
    assert jnp.allclose(out1, ref1, atol=2e-5, rtol=2e-5)
    assert jnp.allclose(jnp.linalg.norm(out1, axis=1), 1.0, atol=1e-5)

    # ---- Multi-featmap fused case: two heads, per-head sliced stores ----
    in_chs = (32, 48)
    x_a = jax.random.normal(k3, (batch, in_chs[0], 1, 1), dtype=jnp.float32)
    x_b = jax.random.normal(k4, (batch, in_chs[1]), dtype=jnp.float32)
    model2 = ReIDEmbeddingPallas(featmap_names=("feat_res4", "feat_res5"),
                                 in_channels=in_chs, dim=16, key=k5)
    feats = {"feat_res4": x_a, "feat_res5": x_b}
    out2 = jax.block_until_ready(model2(feats))
    ref2 = _reference_forward(feats, model2)
    assert out2.shape == (batch, 16)
    assert jnp.allclose(out2, ref2, atol=2e-5, rtol=2e-5)
    assert jnp.allclose(jnp.linalg.norm(out2, axis=1), 1.0, atol=1e-5)

    # ---- bf16 path: dtype-matched MXU feed, multi-step batch grid, lane-aligned dim ----
    batch3, in_ch3, dim3 = 40, 256, 128
    x3 = jax.random.normal(k6, (batch3, in_ch3, 1, 1), dtype=jnp.float32).astype(jnp.bfloat16)
    model3 = ReIDEmbeddingPallas(featmap_names=("feat_res5",),
                                 in_channels=(in_ch3,), dim=dim3, key=k7,
                                 param_dtype=jnp.bfloat16)
    out3 = jax.block_until_ready(model3({"feat_res5": x3}))
    ref3 = _reference_forward({"feat_res5": x3}, model3)
    assert out3.shape == (batch3, dim3) and out3.dtype == jnp.bfloat16
    assert jnp.allclose(out3.astype(jnp.float32), ref3.astype(jnp.float32),
                        atol=1e-2, rtol=1e-2)
    assert jnp.allclose(jnp.linalg.norm(out3.astype(jnp.float32), axis=1), 1.0, atol=2e-2)

    print("KERNEL_OK")
</pallas_src>

<mosaic_0001>
module attributes {stable_mosaic.version = 11 : i64} {
  func.func @_reid_embedding_kernel(%arg0: i32, %arg1: memref<8x32xf32, #tpu.memory_space<vmem>>, %arg2: memref<32x128xf32, #tpu.memory_space<vmem>>, %arg3: memref<8x128xf32, #tpu.memory_space<vmem>>) attributes {dimension_semantics = [#tpu.dimension_semantics<parallel>], iteration_bounds = array<i64: 1>, scalar_prefetch = 0 : i64, scratch_operands = 0 : i64, tpu.core_type = #tpu.core_type<tc>, window_params = [{transform_indices = @transform_0, window_bounds = array<i64: 8, 32>}, {pipeline_mode = #tpu.pipeline_mode<synchronous>, transform_indices = @transform_1, window_bounds = array<i64: 32, 128>}, {transform_indices = @transform_2, window_bounds = array<i64: 8, 128>}]} {
    %c0 = arith.constant 0 : index
    %c0_0 = arith.constant 0 : index
    %0 = vector.load %arg1[%c0, %c0_0] : memref<8x32xf32, #tpu.memory_space<vmem>>, vector<8x32xf32>
    %c0_1 = arith.constant 0 : index
    %c0_2 = arith.constant 0 : index
    %1 = vector.load %arg2[%c0_1, %c0_2] : memref<32x128xf32, #tpu.memory_space<vmem>>, vector<32x128xf32>
    %cst = arith.constant dense<0.000000e+00> : vector<8x128xf32>
    %2 = tpu.matmul %0, %1, %cst {dimension_numbers = #tpu.dot_dimension_numbers<[1], [0], [0], [1], [0, 0, 1, 1], [], []>} : vector<8x32xf32>, vector<32x128xf32>, vector<8x128xf32> -> vector<8x128xf32>
    %3 = arith.mulf %2, %2 : vector<8x128xf32>
    %cst_3 = arith.constant dense<0.000000e+00> : vector<8xf32>
    %4 = vector.multi_reduction <add>, %3, %cst_3 [1] : vector<8x128xf32> to vector<8xf32>
    %5 = vector.shape_cast %4 : vector<8xf32> to vector<8x1xf32>
    %cst_4 = arith.constant 1.000000e-24 : f32
    %6 = vector.broadcast %cst_4 : f32 to vector<8x1xf32>
    %7 = arith.maximumf %5, %6 : vector<8x1xf32>
    %8 = math.rsqrt %7 : vector<8x1xf32>
    %9 = vector.broadcast %8 : vector<8x1xf32> to vector<8x128xf32>
    %10 = arith.mulf %2, %9 : vector<8x128xf32>
    %c0_5 = arith.constant 0 : index
    %c0_6 = arith.constant 0 : index
    %11 = vector.load %arg3[%c0_5, %c0_6] : memref<8x128xf32, #tpu.memory_space<vmem>>, vector<8x128xf32>
    tpu.vector_store %arg3[%c0_5, %c0_6], %10 {strides = array<i32>} : memref<8x128xf32, #tpu.memory_space<vmem>>, vector<8x128xf32>,
    return
  }
  func.func @transform_0(%arg0: i32) -> (i32, i32) {
    %c0_i32 = arith.constant 0 : i32
    %c0_i32_0 = arith.constant 0 : i32
    return %arg0, %c0_i32 : i32, i32
  }
  func.func @transform_1(%arg0: i32) -> (i32, i32) {
    %c0_i32 = arith.constant 0 : i32
    %c0_i32_0 = arith.constant 0 : i32
    %c0_i32_1 = arith.constant 0 : i32
    return %c0_i32, %c0_i32_0 : i32, i32
  }
  func.func @transform_2(%arg0: i32) -> (i32, i32) {
    %c0_i32 = arith.constant 0 : i32
    %c0_i32_0 = arith.constant 0 : i32
    return %arg0, %c0_i32 : i32, i32
  }
}

module attributes {stable_mosaic.version = 11 : i64} {
  func.func @_reid_embedding_kernel(%arg0: i32, %arg1: memref<8x32xf32, #tpu.memory_space<vmem>>, %arg2: memref<32x128xf32, #tpu.memory_space<vmem>>, %arg3: memref<8x128xf32, #tpu.memory_space<vmem>>) attributes {dimension_semantics = [#tpu.dimension_semantics<parallel>], iteration_bounds = array<i64: 1>, scalar_prefetch = 0 : i64, scratch_operands = 0 : i64, tpu.core_type = #tpu.core_type<tc>, window_params = [{transform_indices = @transform_0, window_bounds = array<i64: 8, 32>}, {pipeline_mode = #tpu.pipeline_mode<synchronous>, transform_indices = @transform_1, window_bounds = array<i64: 32, 128>}, {transform_indices = @transform_2, window_bounds = array<i64: 8, 128>}]} {
    %c0 = arith.constant 0 : index
    %c0_0 = arith.constant 0 : index
    %0 = vector.load %arg1[%c0, %c0_0] : memref<8x32xf32, #tpu.memory_space<vmem>>, vector<8x32xf32>
    %c0_1 = arith.constant 0 : index
    %c0_2 = arith.constant 0 : index
    %1 = vector.load %arg2[%c0_1, %c0_2] : memref<32x128xf32, #tpu.memory_space<vmem>>, vector<32x128xf32>
    %cst = arith.constant dense<0.000000e+00> : vector<8x128xf32>
    %2 = tpu.matmul %0, %1, %cst {dimension_numbers = #tpu.dot_dimension_numbers<[1], [0], [0], [1], [0, 0, 1, 1], [], []>} : vector<8x32xf32>, vector<32x128xf32>, vector<8x128xf32> -> vector<8x128xf32>
    %3 = arith.mulf %2, %2 : vector<8x128xf32>
    %cst_3 = arith.constant dense<0.000000e+00> : vector<8xf32>
    %4 = vector.multi_reduction <add>, %3, %cst_3 [1] : vector<8x128xf32> to vector<8xf32>
    %5 = vector.shape_cast %4 : vector<8xf32> to vector<8x1xf32>
    %cst_4 = arith.constant 1.000000e-24 : f32
    %6 = vector.broadcast %cst_4 : f32 to vector<8x1xf32>
    %7 = arith.maximumf %5, %6 : vector<8x1xf32>
    %8 = math.rsqrt %7 : vector<8x1xf32>
    %9 = vector.broadcast %8 : vector<8x1xf32> to vector<8x128xf32>
    %10 = arith.mulf %2, %9 : vector<8x128xf32>
    %c0_5 = arith.constant 0 : index
    %c0_6 = arith.constant 0 : index
    %11 = vector.load %arg3[%c0_5, %c0_6] : memref<8x128xf32, #tpu.memory_space<vmem>>, vector<8x128xf32>
    tpu.vector_store %arg3[%c0_5, %c0_6], %10 {strides = array<i32>} : memref<8x128xf32, #tpu.memory_space<vmem>>, vector<8x128xf32>,
    return
  }
  func.func @transform_0(%arg0: i32) -> (i32, i32) {
    %c0_i32 = arith.constant 0 : i32
    %c0_i32_0 = arith.constant 0 : i32
    return %arg0, %c0_i32 : i32, i32
  }
  func.func @transform_1(%arg0: i32) -> (i32, i32) {
    %c0_i32 = arith.constant 0 : i32
    %c0_i32_0 = arith.constant 0 : i32
    %c0_i32_1 = arith.constant 0 : i32
    return %c0_i32, %c0_i32_0 : i32, i32
  }
  func.func @transform_2(%arg0: i32) -> (i32, i32) {
    %c0_i32 = arith.constant 0 : i32
    %c0_i32_0 = arith.constant 0 : i32
    return %arg0, %c0_i32 : i32, i32
  }
}

</mosaic_0001>

<bundles_post_ra>
// kernel: tpu_custom_call.1
= control target key start
LH: loop header
LB: loop body
LE: loop exit
PB: predicated region body
PF: predicated region fallthrough
CT: control target
= control target key end

     0   :  { %7 = vsyncpa [#allocation3], 0  ;;  %s263_s0 = inlined_call_operand.hbm [shape: f32[8,32], index: 0, kind: input, shape index: {}]   ;;  %s264_s1 = inlined_call_operand.hbm [shape: f32[32,128], index: 1, kind: input, shape index: {}]   ;;  %s265_s2 = inlined_call_operand.hbm [shape: f32[8,128], index: 2, kind: output, shape index: {}]  }
   0x1   :  { %8 = vsyncpa [#allocation6], 0 }
   0x2   :  { %9 = vsyncpa [#allocation4], 0  ;;  %s232_s9 = smov [#allocation2]   ;;  %s233_s11 = smov [#allocation5]  }
   0x3   :  { %s16_s10 = sshll.u32 %s232_s9, 4  ;;  %s25_s12 = sshll.u32 %s233_s11, 4  ;;  %s17_s10 = int_to_ptr.vmem [resolvable:$true] %s16_s10  ;;  %s26_s12 = int_to_ptr.vmem [resolvable:$true] %s25_s12 }
   0x4   :  { %s174_s13 = scalar_lea.vmem %s17_s10, 128  ;;  %p179_p1 = scmp.lt.s32.totalorder %s17_s10, %s17_s10 }
   0x5   :  { %p175_p0 = scmp.ne.s32.totalorder %s17_s10, %s174_s13  ;;  %p180_p2 = scmp.lt.s32.totalorder %s174_s13, %s174_s13 }
   0x7   :  { %p181_p3 = por %p180_p2, %p179_p1 }
   0x9   :  { %p182_p4 = pnand %p181_p3, %p175_p0 }
   0xb   :  { %185 = shalt.err (!%p182_p4)
}
   0xc   :  { %19 = dma.hbm_to_vmem [thread:$0]  %s263_s0, 128, %s17_s10, [#allocation3]  }
   0xd   :  { %s194_s16 = scalar_lea.vmem %s26_s12, 512  ;;  %p199_p6 = scmp.lt.s32.totalorder %s26_s12, %s26_s12 }
   0xe   :  { %p195_p5 = scmp.ne.s32.totalorder %s26_s12, %s194_s16  ;;  %p200_p7 = scmp.lt.s32.totalorder %s194_s16, %s194_s16 }
  0x10   :  { %p201_p8 = por %p200_p7, %p199_p6 }
  0x12   :  { %p202_p9 = pnand %p201_p8, %p195_p5 }
  0x14   :  { %205 = shalt.err (!%p202_p9)
}
  0x15   :  { %s234_s17 = smov 128   ;;  %s235_s18 = smov 8  }
  0x16   :  { %31 = dma.hbm_to_vmem [thread:$0]  %s264_s1, 512, %s26_s12, [#allocation6], %s234_s17, %s234_s17, %s235_s18  }
  0x17   :  { %226 = dma.done.wait [#allocation3], 128  }
  0x18   :  { %227 = vsyncadd [#allocation3], 4294967168 }
  0x19   :  { %228 = dma.done.wait [#allocation6], 512  }
  0x1a   :  { %229 = vsyncadd [#allocation6], 4294966784  ;;  %v236_v0 = vmov 0.0   ;;  %vm237_vm0 = vmmov 0   ;;  %v42_v1 = vld [vmem:[#allocation5 + $0x18] sm:$0xff]  ;;  %v41_v2 = vld [vmem:[#allocation5 + $0x10] sm:$0xff] }
  0x1b   :  { %146 = vmatprep.subr.mxu0 %v236_v0  ;;  %154 = vmatprep.mubr.msk.f32.mxu0 %vm237_vm0, %v236_v0  ;;  %v40_v3 = vld [vmem:[#allocation5 + $0x8] sm:$0xff]  ;;  %v39_v4 = vld [vmem:[#allocation5] sm:$0xff]  ;;  %v38_v5 = vld [vmem:[#allocation2] sm:$0xff]  ;;  %vm43_vm1 = vcmask 261120   ;;  %s238_s0 = smov [#allocation7]  }
  0x1c   :  { %147 = vmatpush3.msra.mxu0 %v42_v1  ;;  %s130_s1 = sshll.u32 %s238_s0, 4  ;;  %s131_s1 = int_to_ptr.vmem [resolvable:$true] %s130_s1 }
  0x1d   :  { %148 = vmatprep.subr.mxu0 %v236_v0  ;;  %s206_s21 = scalar_lea.vmem %s131_s1, 128  ;;  %p211_p11 = scmp.lt.s32.totalorder %s131_s1, %s131_s1 }
  0x1e   :  { %149 = vmatpush3.msra.mxu0 %v41_v2  ;;  %p207_p10 = scmp.ne.s32.totalorder %s131_s1, %s206_s21  ;;  %p212_p12 = scmp.lt.s32.totalorder %s206_s21, %s206_s21 }
  0x1f   :  { %150 = vmatprep.subr.mxu0 %v236_v0 }
  0x20   :  { %151 = vmatpush3.msra.mxu0 %v40_v3  ;;  %p213_p13 = por %p212_p12, %p211_p11 }
  0x21   :  { %152 = vmatprep.subr.mxu0 %v236_v0 }
  0x22   :  { %153 = vmatpush3.msra.mxu0 %v39_v4  ;;  %p214_p0 = pnand %p213_p13, %p207_p10 }
  0x23   :  { %155 = vmatmul.mubr.msk.f32.vlgmr.msra.gmra.mxu0 %vm43_vm1, %v38_v5 }
  0xe3   :  { %v113_v6 = vpop.f32.mrf.mxu0 }
  0xe4   :  { %v117_v7 = vmul.f32 %v113_v6, %v113_v6 }
  0xe5   :  { %v156_v8 = vpop.f32.mrf.mxu0 }
  0xe6   :  { %118 = vadd.xlane.f32.xlu0 %v117_v7 }
 0x16f   :  { %v119_v9 = vpop.xlane.xlu0 %118 }
 0x170   :  { %v120_v10 = vmax.f32 %v119_v9, 1e-24 }
 0x172   :  { %164 = vrsqrt.f32 %v120_v10 }
 0x17f   :  { %v165_v11 = vpop.eup %164 }
 0x180   :  { %v122_v12 = vmul.f32 %v165_v11, %v113_v6 }
 0x182   :  { %123 = vst [vmem:[#allocation7] sm:$0xff] %v122_v12 }
 0x183   :  { %217 = shalt.err (!%p214_p0)
}
 0x184   :  { %133 = dma.vmem_to_hbm [thread:$0]  %s131_s1, 128, %s265_s2, [#allocation4]  }
 0x185   :  { %230 = dma.done.wait [#allocation4], 128  }
 0x186   :  { %231 = vsyncadd [#allocation4], 4294967168 }
 0x187   :  { %137 = vsyncpa [#allocation3], 1 }
 0x188   :  { %138 = vsyncpa [#allocation6], 1 }
 0x189   :  { %139 = vsyncpa [#allocation4], 1 }

// kernel: tpu_custom_call.1
= control target key start
LH: loop header
LB: loop body
LE: loop exit
PB: predicated region body
PF: predicated region fallthrough
CT: control target
= control target key end

     0   :  { %7 = vsyncpa [#allocation3], 0  ;;  %s263_s0 = inlined_call_operand.hbm [shape: f32[8,32], index: 0, kind: input, shape index: {}]   ;;  %s264_s1 = inlined_call_operand.hbm [shape: f32[32,128], index: 1, kind: input, shape index: {}]   ;;  %s265_s2 = inlined_call_operand.hbm [shape: f32[8,128], index: 2, kind: output, shape index: {}]  }
   0x1   :  { %8 = vsyncpa [#allocation6], 0 }
   0x2   :  { %9 = vsyncpa [#allocation4], 0  ;;  %s232_s9 = smov [#allocation2]   ;;  %s233_s11 = smov [#allocation5]  }
   0x3   :  { %s16_s10 = sshll.u32 %s232_s9, 4  ;;  %s25_s12 = sshll.u32 %s233_s11, 4  ;;  %s17_s10 = int_to_ptr.vmem [resolvable:$true] %s16_s10  ;;  %s26_s12 = int_to_ptr.vmem [resolvable:$true] %s25_s12 }
   0x4   :  { %s174_s13 = scalar_lea.vmem %s17_s10, 128  ;;  %p179_p1 = scmp.lt.s32.totalorder %s17_s10, %s17_s10 }
   0x5   :  { %p175_p0 = scmp.ne.s32.totalorder %s17_s10, %s174_s13  ;;  %p180_p2 = scmp.lt.s32.totalorder %s174_s13, %s174_s13 }
   0x7   :  { %p181_p3 = por %p180_p2, %p179_p1 }
   0x9   :  { %p182_p4 = pnand %p181_p3, %p175_p0 }
   0xb   :  { %185 = shalt.err (!%p182_p4)
}
   0xc   :  { %19 = dma.hbm_to_vmem [thread:$0]  %s263_s0, 128, %s17_s10, [#allocation3]  }
   0xd   :  { %s194_s16 = scalar_lea.vmem %s26_s12, 512  ;;  %p199_p6 = scmp.lt.s32.totalorder %s26_s12, %s26_s12 }
   0xe   :  { %p195_p5 = scmp.ne.s32.totalorder %s26_s12, %s194_s16  ;;  %p200_p7 = scmp.lt.s32.totalorder %s194_s16, %s194_s16 }
  0x10   :  { %p201_p8 = por %p200_p7, %p199_p6 }
  0x12   :  { %p202_p9 = pnand %p201_p8, %p195_p5 }
  0x14   :  { %205 = shalt.err (!%p202_p9)
}
  0x15   :  { %s234_s17 = smov 128   ;;  %s235_s18 = smov 8  }
  0x16   :  { %31 = dma.hbm_to_vmem [thread:$0]  %s264_s1, 512, %s26_s12, [#allocation6], %s234_s17, %s234_s17, %s235_s18  }
  0x17   :  { %226 = dma.done.wait [#allocation3], 128  }
  0x18   :  { %227 = vsyncadd [#allocation3], 4294967168 }
  0x19   :  { %228 = dma.done.wait [#allocation6], 512  }
  0x1a   :  { %229 = vsyncadd [#allocation6], 4294966784  ;;  %v236_v0 = vmov 0.0   ;;  %vm237_vm0 = vmmov 0   ;;  %v42_v1 = vld [vmem:[#allocation5 + $0x18] sm:$0xff]  ;;  %v41_v2 = vld [vmem:[#allocation5 + $0x10] sm:$0xff] }
  0x1b   :  { %146 = vmatprep.subr.mxu0 %v236_v0  ;;  %154 = vmatprep.mubr.msk.f32.mxu0 %vm237_vm0, %v236_v0  ;;  %v40_v3 = vld [vmem:[#allocation5 + $0x8] sm:$0xff]  ;;  %v39_v4 = vld [vmem:[#allocation5] sm:$0xff]  ;;  %v38_v5 = vld [vmem:[#allocation2] sm:$0xff]  ;;  %vm43_vm1 = vcmask 261120   ;;  %s238_s0 = smov [#allocation7]  }
  0x1c   :  { %147 = vmatpush3.msra.mxu0 %v42_v1  ;;  %s130_s1 = sshll.u32 %s238_s0, 4  ;;  %s131_s1 = int_to_ptr.vmem [resolvable:$true] %s130_s1 }
  0x1d   :  { %148 = vmatprep.subr.mxu0 %v236_v0  ;;  %s206_s21 = scalar_lea.vmem %s131_s1, 128  ;;  %p211_p11 = scmp.lt.s32.totalorder %s131_s1, %s131_s1 }
  0x1e   :  { %149 = vmatpush3.msra.mxu0 %v41_v2  ;;  %p207_p10 = scmp.ne.s32.totalorder %s131_s1, %s206_s21  ;;  %p212_p12 = scmp.lt.s32.totalorder %s206_s21, %s206_s21 }
  0x1f   :  { %150 = vmatprep.subr.mxu0 %v236_v0 }
  0x20   :  { %151 = vmatpush3.msra.mxu0 %v40_v3  ;;  %p213_p13 = por %p212_p12, %p211_p11 }
  0x21   :  { %152 = vmatprep.subr.mxu0 %v236_v0 }
  0x22   :  { %153 = vmatpush3.msra.mxu0 %v39_v4  ;;  %p214_p0 = pnand %p213_p13, %p207_p10 }
  0x23   :  { %155 = vmatmul.mubr.msk.f32.vlgmr.msra.gmra.mxu0 %vm43_vm1, %v38_v5 }
  0xe3   :  { %v113_v6 = vpop.f32.mrf.mxu0 }
  0xe4   :  { %v117_v7 = vmul.f32 %v113_v6, %v113_v6 }
  0xe5   :  { %v156_v8 = vpop.f32.mrf.mxu0 }
  0xe6   :  { %118 = vadd.xlane.f32.xlu0 %v117_v7 }
 0x16f   :  { %v119_v9 = vpop.xlane.xlu0 %118 }
 0x170   :  { %v120_v10 = vmax.f32 %v119_v9, 1e-24 }
 0x172   :  { %164 = vrsqrt.f32 %v120_v10 }
 0x17f   :  { %v165_v11 = vpop.eup %164 }
 0x180   :  { %v122_v12 = vmul.f32 %v165_v11, %v113_v6 }
 0x182   :  { %123 = vst [vmem:[#allocation7] sm:$0xff] %v122_v12 }
 0x183   :  { %217 = shalt.err (!%p214_p0)
}
 0x184   :  { %133 = dma.vmem_to_hbm [thread:$0]  %s131_s1, 128, %s265_s2, [#allocation4]  }
 0x185   :  { %230 = dma.done.wait [#allocation4], 128  }
 0x186   :  { %231 = vsyncadd [#allocation4], 4294967168 }
 0x187   :  { %137 = vsyncpa [#allocation3], 1 }
 0x188   :  { %138 = vsyncpa [#allocation6], 1 }
 0x189   :  { %139 = vsyncpa [#allocation4], 1 }

</bundles_post_ra>
